<compile_context>
chip_gen: v6e
topology: v6e:2x2x1
jax: 0.10.0
libtpu: 0.0.40
codegen_flags: <defaults>
</compile_context>

<pallas_src>
import jax
import jax.numpy as jnp
from jax.experimental import pallas as pl
from jax.experimental.pallas import tpu as pltpu

_LANE = 128


def _round_up(n, m):
    return ((n + m - 1) // m) * m


def mlp_kernel(x_ref,
               w1_ref, b1_ref,
               w2_ref, b2_ref,
               w3_ref, b3_ref,
               w4_ref, b4_ref,
               w5_ref, b5_ref,
               o_ref):
    # bf16 operands into the MXU, f32 accumulation + f32 elementwise (bias/ReLU).
    h = x_ref[...].astype(jnp.bfloat16)

    h = jnp.dot(h, w1_ref[...], preferred_element_type=jnp.float32) + b1_ref[...]
    h = jnp.maximum(h, 0.0).astype(jnp.bfloat16)

    h = jnp.dot(h, w2_ref[...], preferred_element_type=jnp.float32) + b2_ref[...]
    h = jnp.maximum(h, 0.0).astype(jnp.bfloat16)

    h = jnp.dot(h, w3_ref[...], preferred_element_type=jnp.float32) + b3_ref[...]
    h = jnp.maximum(h, 0.0).astype(jnp.bfloat16)

    h = jnp.dot(h, w4_ref[...], preferred_element_type=jnp.float32) + b4_ref[...]
    h = jnp.maximum(h, 0.0).astype(jnp.bfloat16)

    h = jnp.dot(h, w5_ref[...], preferred_element_type=jnp.float32) + b5_ref[...]

    o_ref[...] = h.astype(o_ref.dtype)  # lane-dense (TM, 128) store


def mlp_forward(x, params, *, tm=None):
    """x: (batch, input_size) f32. params: list of (W, b) with W=(in, out), b=(1, out)."""
    batch, in_features = x.shape
    out_features = params[-1][0].shape[1]

    dims = [in_features] + [w.shape[1] for (w, _) in params]
    pdims = [_round_up(d, _LANE) for d in dims]

    # Zero-pad weights/biases to lane-dense shapes; weights cast to bf16 for the MXU.
    padded_params = []
    for i, (w, b) in enumerate(params):
        wp = (jnp.zeros((pdims[i], pdims[i + 1]), jnp.float32)
              .at[:dims[i], :dims[i + 1]].set(w)
              .astype(jnp.bfloat16))
        bp = (jnp.zeros((1, pdims[i + 1]), jnp.float32)
              .at[:, :dims[i + 1]].set(b.reshape(1, -1)))
        padded_params.append((wp, bp))

    # Batch tiling: large TM for big batches (amortize per-step overhead),
    # multiple of 8 rows (f32 sublane) otherwise.
    if tm is None:
        tm = 512 if batch >= 512 else _round_up(batch, 8)
    pbatch = _round_up(batch, tm)
    xp = jnp.zeros((pbatch, pdims[0]), jnp.float32).at[:batch, :in_features].set(x)

    grid = (pbatch // tm,)

    flat_args = [xp]
    in_specs = [pl.BlockSpec((tm, pdims[0]), lambda i: (i, 0))]
    for (wp, bp) in padded_params:
        flat_args.extend([wp, bp])
        in_specs.append(pl.BlockSpec(wp.shape, lambda i: (0, 0)))   # resident in VMEM
        in_specs.append(pl.BlockSpec(bp.shape, lambda i: (0, 0)))   # resident in VMEM

    out_padded = pl.pallas_call(
        mlp_kernel,
        out_shape=jax.ShapeDtypeStruct((pbatch, pdims[-1]), jnp.float32),
        grid=grid,
        in_specs=in_specs,
        out_specs=pl.BlockSpec((tm, pdims[-1]), lambda i: (i, 0)),
        compiler_params=pltpu.CompilerParams(
            dimension_semantics=("parallel",)),  # shard batch tiles across TCs on v7x
    )(*flat_args)

    return out_padded[:batch, :out_features]


def init_linear(key, fan_in, fan_out):
    # Deterministic init mimicking torch.nn.Linear defaults: U(-1/sqrt(fan_in), 1/sqrt(fan_in)).
    kw, kb = jax.random.split(key)
    bound = 1.0 / jnp.sqrt(jnp.float32(fan_in))
    w = jax.random.uniform(kw, (fan_in, fan_out), jnp.float32, -bound, bound)
    b = jax.random.uniform(kb, (1, fan_out), jnp.float32, -bound, bound)
    return w, b


if __name__ == "__main__":
    # Small shapes consistent with the module: input_size=16, hidden_sizes=[32,32,32,32], output_size=8.
    batch = 8
    input_size = 16
    hidden_sizes = [32, 32, 32, 32]
    output_size = 8

    key = jax.random.PRNGKey(0)
    keys = jax.random.split(key, 6)

    dims = [input_size] + hidden_sizes + [output_size]
    params = [init_linear(keys[i], dims[i], dims[i + 1]) for i in range(5)]

    x = jax.random.normal(keys[5], (batch, input_size), jnp.float32)

    out = mlp_forward(x, params)
    out = jax.block_until_ready(out)

    # Plain-JAX f32 reference of the same forward pass (kernel uses bf16 MXU operands
    # with f32 accumulation, so compare with a correspondingly loosened tolerance).
    ref = x
    for i, (w, b) in enumerate(params):
        ref = ref @ w + b
        if i < 4:
            ref = jnp.maximum(ref, 0.0)

    assert out.shape == (batch, output_size)
    assert jnp.allclose(out, ref, atol=1e-2, rtol=1e-2), (
        f"max abs err {jnp.max(jnp.abs(out - ref))}")

    print("KERNEL_OK")
</pallas_src>

<mosaic_0001>
module attributes {stable_mosaic.version = 11 : i64} {
  func.func @mlp_kernel(%arg0: i32, %arg1: memref<8x128xf32, #tpu.memory_space<vmem>>, %arg2: memref<128x128xbf16, #tpu.memory_space<vmem>>, %arg3: memref<1x128xf32, #tpu.memory_space<vmem>>, %arg4: memref<128x128xbf16, #tpu.memory_space<vmem>>, %arg5: memref<1x128xf32, #tpu.memory_space<vmem>>, %arg6: memref<128x128xbf16, #tpu.memory_space<vmem>>, %arg7: memref<1x128xf32, #tpu.memory_space<vmem>>, %arg8: memref<128x128xbf16, #tpu.memory_space<vmem>>, %arg9: memref<1x128xf32, #tpu.memory_space<vmem>>, %arg10: memref<128x128xbf16, #tpu.memory_space<vmem>>, %arg11: memref<1x128xf32, #tpu.memory_space<vmem>>, %arg12: memref<8x128xf32, #tpu.memory_space<vmem>>) attributes {dimension_semantics = [#tpu.dimension_semantics<parallel>], iteration_bounds = array<i64: 1>, scalar_prefetch = 0 : i64, scratch_operands = 0 : i64, tpu.core_type = #tpu.core_type<tc>, window_params = [{transform_indices = @transform_0, window_bounds = array<i64: 8, 128>}, {pipeline_mode = #tpu.pipeline_mode<synchronous>, transform_indices = @transform_1, window_bounds = array<i64: 128, 128>}, {pipeline_mode = #tpu.pipeline_mode<synchronous>, transform_indices = @transform_2, window_bounds = array<i64: 1, 128>}, {pipeline_mode = #tpu.pipeline_mode<synchronous>, transform_indices = @transform_3, window_bounds = array<i64: 128, 128>}, {pipeline_mode = #tpu.pipeline_mode<synchronous>, transform_indices = @transform_4, window_bounds = array<i64: 1, 128>}, {pipeline_mode = #tpu.pipeline_mode<synchronous>, transform_indices = @transform_5, window_bounds = array<i64: 128, 128>}, {pipeline_mode = #tpu.pipeline_mode<synchronous>, transform_indices = @transform_6, window_bounds = array<i64: 1, 128>}, {pipeline_mode = #tpu.pipeline_mode<synchronous>, transform_indices = @transform_7, window_bounds = array<i64: 128, 128>}, {pipeline_mode = #tpu.pipeline_mode<synchronous>, transform_indices = @transform_8, window_bounds = array<i64: 1, 128>}, {pipeline_mode = #tpu.pipeline_mode<synchronous>, transform_indices = @transform_9, window_bounds = array<i64: 128, 128>}, {pipeline_mode = #tpu.pipeline_mode<synchronous>, transform_indices = @transform_10, window_bounds = array<i64: 1, 128>}, {transform_indices = @transform_11, window_bounds = array<i64: 8, 128>}]} {
    %c0 = arith.constant 0 : index
    %c0_0 = arith.constant 0 : index
    %0 = vector.load %arg1[%c0, %c0_0] : memref<8x128xf32, #tpu.memory_space<vmem>>, vector<8x128xf32>
    %1 = arith.truncf %0 : vector<8x128xf32> to vector<8x128xbf16>
    %c0_1 = arith.constant 0 : index
    %c0_2 = arith.constant 0 : index
    %2 = vector.load %arg2[%c0_1, %c0_2] : memref<128x128xbf16, #tpu.memory_space<vmem>>, vector<128x128xbf16>
    %cst = arith.constant dense<0.000000e+00> : vector<8x128xf32>
    %3 = tpu.matmul %1, %2, %cst {dimension_numbers = #tpu.dot_dimension_numbers<[1], [0], [0], [1], [0, 0, 1, 1], [], []>} : vector<8x128xbf16>, vector<128x128xbf16>, vector<8x128xf32> -> vector<8x128xf32>
    %c0_3 = arith.constant 0 : index
    %c0_4 = arith.constant 0 : index
    %4 = vector.load %arg3[%c0_3, %c0_4] : memref<1x128xf32, #tpu.memory_space<vmem>>, vector<1x128xf32>
    %5 = vector.broadcast %4 : vector<1x128xf32> to vector<8x128xf32>
    %6 = arith.addf %3, %5 : vector<8x128xf32>
    %cst_5 = arith.constant 0.000000e+00 : f32
    %7 = vector.broadcast %cst_5 : f32 to vector<8x128xf32>
    %8 = arith.maximumf %6, %7 : vector<8x128xf32>
    %9 = arith.truncf %8 : vector<8x128xf32> to vector<8x128xbf16>
    %c0_6 = arith.constant 0 : index
    %c0_7 = arith.constant 0 : index
    %10 = vector.load %arg4[%c0_6, %c0_7] : memref<128x128xbf16, #tpu.memory_space<vmem>>, vector<128x128xbf16>
    %cst_8 = arith.constant dense<0.000000e+00> : vector<8x128xf32>
    %11 = tpu.matmul %9, %10, %cst_8 {dimension_numbers = #tpu.dot_dimension_numbers<[1], [0], [0], [1], [0, 0, 1, 1], [], []>} : vector<8x128xbf16>, vector<128x128xbf16>, vector<8x128xf32> -> vector<8x128xf32>
    %c0_9 = arith.constant 0 : index
    %c0_10 = arith.constant 0 : index
    %12 = vector.load %arg5[%c0_9, %c0_10] : memref<1x128xf32, #tpu.memory_space<vmem>>, vector<1x128xf32>
    %13 = vector.broadcast %12 : vector<1x128xf32> to vector<8x128xf32>
    %14 = arith.addf %11, %13 : vector<8x128xf32>
    %cst_11 = arith.constant 0.000000e+00 : f32
    %15 = vector.broadcast %cst_11 : f32 to vector<8x128xf32>
    %16 = arith.maximumf %14, %15 : vector<8x128xf32>
    %17 = arith.truncf %16 : vector<8x128xf32> to vector<8x128xbf16>
    %c0_12 = arith.constant 0 : index
    %c0_13 = arith.constant 0 : index
    %18 = vector.load %arg6[%c0_12, %c0_13] : memref<128x128xbf16, #tpu.memory_space<vmem>>, vector<128x128xbf16>
    %cst_14 = arith.constant dense<0.000000e+00> : vector<8x128xf32>
    %19 = tpu.matmul %17, %18, %cst_14 {dimension_numbers = #tpu.dot_dimension_numbers<[1], [0], [0], [1], [0, 0, 1, 1], [], []>} : vector<8x128xbf16>, vector<128x128xbf16>, vector<8x128xf32> -> vector<8x128xf32>
    %c0_15 = arith.constant 0 : index
    %c0_16 = arith.constant 0 : index
    %20 = vector.load %arg7[%c0_15, %c0_16] : memref<1x128xf32, #tpu.memory_space<vmem>>, vector<1x128xf32>
    %21 = vector.broadcast %20 : vector<1x128xf32> to vector<8x128xf32>
    %22 = arith.addf %19, %21 : vector<8x128xf32>
    %cst_17 = arith.constant 0.000000e+00 : f32
    %23 = vector.broadcast %cst_17 : f32 to vector<8x128xf32>
    %24 = arith.maximumf %22, %23 : vector<8x128xf32>
    %25 = arith.truncf %24 : vector<8x128xf32> to vector<8x128xbf16>
    %c0_18 = arith.constant 0 : index
    %c0_19 = arith.constant 0 : index
    %26 = vector.load %arg8[%c0_18, %c0_19] : memref<128x128xbf16, #tpu.memory_space<vmem>>, vector<128x128xbf16>
    %cst_20 = arith.constant dense<0.000000e+00> : vector<8x128xf32>
    %27 = tpu.matmul %25, %26, %cst_20 {dimension_numbers = #tpu.dot_dimension_numbers<[1], [0], [0], [1], [0, 0, 1, 1], [], []>} : vector<8x128xbf16>, vector<128x128xbf16>, vector<8x128xf32> -> vector<8x128xf32>
    %c0_21 = arith.constant 0 : index
    %c0_22 = arith.constant 0 : index
    %28 = vector.load %arg9[%c0_21, %c0_22] : memref<1x128xf32, #tpu.memory_space<vmem>>, vector<1x128xf32>
    %29 = vector.broadcast %28 : vector<1x128xf32> to vector<8x128xf32>
    %30 = arith.addf %27, %29 : vector<8x128xf32>
    %cst_23 = arith.constant 0.000000e+00 : f32
    %31 = vector.broadcast %cst_23 : f32 to vector<8x128xf32>
    %32 = arith.maximumf %30, %31 : vector<8x128xf32>
    %33 = arith.truncf %32 : vector<8x128xf32> to vector<8x128xbf16>
    %c0_24 = arith.constant 0 : index
    %c0_25 = arith.constant 0 : index
    %34 = vector.load %arg10[%c0_24, %c0_25] : memref<128x128xbf16, #tpu.memory_space<vmem>>, vector<128x128xbf16>
    %cst_26 = arith.constant dense<0.000000e+00> : vector<8x128xf32>
    %35 = tpu.matmul %33, %34, %cst_26 {dimension_numbers = #tpu.dot_dimension_numbers<[1], [0], [0], [1], [0, 0, 1, 1], [], []>} : vector<8x128xbf16>, vector<128x128xbf16>, vector<8x128xf32> -> vector<8x128xf32>
    %c0_27 = arith.constant 0 : index
    %c0_28 = arith.constant 0 : index
    %36 = vector.load %arg11[%c0_27, %c0_28] : memref<1x128xf32, #tpu.memory_space<vmem>>, vector<1x128xf32>
    %37 = vector.broadcast %36 : vector<1x128xf32> to vector<8x128xf32>
    %38 = arith.addf %35, %37 : vector<8x128xf32>
    %c0_29 = arith.constant 0 : index
    %c0_30 = arith.constant 0 : index
    %39 = vector.load %arg12[%c0_29, %c0_30] : memref<8x128xf32, #tpu.memory_space<vmem>>, vector<8x128xf32>
    tpu.vector_store %arg12[%c0_29, %c0_30], %38 {strides = array<i32>} : memref<8x128xf32, #tpu.memory_space<vmem>>, vector<8x128xf32>,
    return
  }
  func.func @transform_0(%arg0: i32) -> (i32, i32) {
    %c0_i32 = arith.constant 0 : i32
    %c0_i32_0 = arith.constant 0 : i32
    return %arg0, %c0_i32 : i32, i32
  }
  func.func @transform_1(%arg0: i32) -> (i32, i32) {
    %c0_i32 = arith.constant 0 : i32
    %c0_i32_0 = arith.constant 0 : i32
    %c0_i32_1 = arith.constant 0 : i32
    return %c0_i32, %c0_i32_0 : i32, i32
  }
  func.func @transform_2(%arg0: i32) -> (i32, i32) {
    %c0_i32 = arith.constant 0 : i32
    %c0_i32_0 = arith.constant 0 : i32
    %c0_i32_1 = arith.constant 0 : i32
    return %c0_i32, %c0_i32_0 : i32, i32
  }
  func.func @transform_3(%arg0: i32) -> (i32, i32) {
    %c0_i32 = arith.constant 0 : i32
    %c0_i32_0 = arith.constant 0 : i32
    %c0_i32_1 = arith.constant 0 : i32
    return %c0_i32, %c0_i32_0 : i32, i32
  }
  func.func @transform_4(%arg0: i32) -> (i32, i32) {
    %c0_i32 = arith.constant 0 : i32
    %c0_i32_0 = arith.constant 0 : i32
    %c0_i32_1 = arith.constant 0 : i32
    return %c0_i32, %c0_i32_0 : i32, i32
  }
  func.func @transform_5(%arg0: i32) -> (i32, i32) {
    %c0_i32 = arith.constant 0 : i32
    %c0_i32_0 = arith.constant 0 : i32
    %c0_i32_1 = arith.constant 0 : i32
    return %c0_i32, %c0_i32_0 : i32, i32
  }
  func.func @transform_6(%arg0: i32) -> (i32, i32) {
    %c0_i32 = arith.constant 0 : i32
    %c0_i32_0 = arith.constant 0 : i32
    %c0_i32_1 = arith.constant 0 : i32
    return %c0_i32, %c0_i32_0 : i32, i32
  }
  func.func @transform_7(%arg0: i32) -> (i32, i32) {
    %c0_i32 = arith.constant 0 : i32
    %c0_i32_0 = arith.constant 0 : i32
    %c0_i32_1 = arith.constant 0 : i32
    return %c0_i32, %c0_i32_0 : i32, i32
  }
  func.func @transform_8(%arg0: i32) -> (i32, i32) {
    %c0_i32 = arith.constant 0 : i32
    %c0_i32_0 = arith.constant 0 : i32
    %c0_i32_1 = arith.constant 0 : i32
    return %c0_i32, %c0_i32_0 : i32, i32
  }
  func.func @transform_9(%arg0: i32) -> (i32, i32) {
    %c0_i32 = arith.constant 0 : i32
    %c0_i32_0 = arith.constant 0 : i32
    %c0_i32_1 = arith.constant 0 : i32
    return %c0_i32, %c0_i32_0 : i32, i32
  }
  func.func @transform_10(%arg0: i32) -> (i32, i32) {
    %c0_i32 = arith.constant 0 : i32
    %c0_i32_0 = arith.constant 0 : i32
    %c0_i32_1 = arith.constant 0 : i32
    return %c0_i32, %c0_i32_0 : i32, i32
  }
  func.func @transform_11(%arg0: i32) -> (i32, i32) {
    %c0_i32 = arith.constant 0 : i32
    %c0_i32_0 = arith.constant 0 : i32
    return %arg0, %c0_i32 : i32, i32
  }
}

</mosaic_0001>

<bundles_post_ra>
// kernel: tpu_custom_call.1
= control target key start
LH: loop header
LB: loop body
LE: loop exit
PB: predicated region body
PF: predicated region fallthrough
CT: control target
= control target key end

     0   :  { %16 = vsyncpa [#allocation3], 0  ;;  %s1267_s0 = inlined_call_operand.hbm [shape: f32[8,128], index: 0, kind: input, shape index: {}]   ;;  %s1268_s1 = inlined_call_operand.hbm [shape: bf16[128,128], index: 1, kind: input, shape index: {}]   ;;  %s1269_s2 = inlined_call_operand.vmem [shape: f32[1,128], index: 2, kind: input, shape index: {}]   ;;  %s1270_s3 = inlined_call_operand.hbm [shape: bf16[128,128], index: 3, kind: input, shape index: {}]   ;;  %s1271_s4 = inlined_call_operand.vmem [shape: f32[1,128], index: 4, kind: input, shape index: {}]   ;;  %s1272_s5 = inlined_call_operand.hbm [shape: bf16[128,128], index: 5, kind: input, shape index: {}]   ;;  %s1273_s6 = inlined_call_operand.vmem [shape: f32[1,128], index: 6, kind: input, shape index: {}]   ;;  %s1274_s7 = inlined_call_operand.hbm [shape: bf16[128,128], index: 7, kind: input, shape index: {}]   ;;  %s1275_s8 = inlined_call_operand.vmem [shape: f32[1,128], index: 8, kind: input, shape index: {}]   ;;  %s1276_s9 = inlined_call_operand.hbm [shape: bf16[128,128], index: 9, kind: input, shape index: {}]   ;;  %s1277_s10 = inlined_call_operand.vmem [shape: f32[1,128], index: 10, kind: input, shape index: {}]   ;;  %s1278_s11 = inlined_call_operand.hbm [shape: f32[8,128], index: 11, kind: output, shape index: {}]  }
   0x1   :  { %17 = vsyncpa [#allocation6], 0 }
   0x2   :  { %18 = vsyncpa [#allocation9], 0 }
   0x3   :  { %19 = vsyncpa [#allocation12], 0 }
   0x4   :  { %20 = vsyncpa [#allocation4], 0  ;;  %s1095_s17 = smov [#allocation5]  }
   0x5   :  { %s36_s18 = sshll.u32 %s1095_s17, 4  ;;  %s37_s18 = int_to_ptr.vmem [resolvable:$true] %s36_s18 }
   0x6   :  { %s953_s19 = scalar_lea.vmem %s37_s18, 1024  ;;  %p958_p1 = scmp.lt.s32.totalorder %s37_s18, %s37_s18 }
   0x7   :  { %p954_p0 = scmp.ne.s32.totalorder %s37_s18, %s953_s19  ;;  %p959_p2 = scmp.lt.s32.totalorder %s953_s19, %s953_s19 }
   0x9   :  { %p960_p3 = por %p959_p2, %p958_p1 }
   0xb   :  { %p961_p4 = pnand %p960_p3, %p954_p0 }
   0xd   :  { %964 = shalt.err (!%p961_p4)
}
   0xe   :  { %s1096_s20 = smov 64   ;;  %s1097_s21 = smov 4  }
   0xf   :  { %42 = dma.hbm_to_vmem [thread:$0]  %s1268_s1, 1024, %s37_s18, [#allocation6], %s1096_s20, %s1096_s20, %s1097_s21  }
  0x10   :  { %s1098_s24 = smov [#allocation8]   ;;  %s1099_s26 = smov [#allocation2]  }
  0x11   :  { %s64_s25 = sshll.u32 %s1098_s24, 4  ;;  %s27_s27 = sshll.u32 %s1099_s26, 4  ;;  %s65_s25 = int_to_ptr.vmem [resolvable:$true] %s64_s25  ;;  %s28_s27 = int_to_ptr.vmem [resolvable:$true] %s27_s27 }
  0x12   :  { %s973_s28 = scalar_lea.vmem %s65_s25, 1024  ;;  %p978_p6 = scmp.lt.s32.totalorder %s65_s25, %s65_s25 }
  0x13   :  { %p974_p5 = scmp.ne.s32.totalorder %s65_s25, %s973_s28  ;;  %p979_p7 = scmp.lt.s32.totalorder %s973_s28, %s973_s28 }
  0x15   :  { %p980_p8 = por %p979_p7, %p978_p6 }
  0x17   :  { %p981_p9 = pnand %p980_p8, %p974_p5 }
  0x19   :  { %984 = shalt.err (!%p981_p9)
}
  0x1a   :  { %70 = dma.hbm_to_vmem [thread:$0]  %s1272_s5, 1024, %s65_s25, [#allocation9], %s1096_s20, %s1096_s20, %s1097_s21  }
  0x1b   :  { %s993_s1 = scalar_lea.vmem %s28_s27, 128  ;;  %p998_p11 = scmp.lt.s32.totalorder %s28_s27, %s28_s27 }
  0x1c   :  { %p994_p10 = scmp.ne.s32.totalorder %s28_s27, %s993_s1  ;;  %p999_p12 = scmp.lt.s32.totalorder %s993_s1, %s993_s1 }
  0x1e   :  { %p1000_p13 = por %p999_p12, %p998_p11 }
  0x20   :  { %p1001_p0 = pnand %p1000_p13, %p994_p10 }
  0x22   :  { %1004 = shalt.err (!%p1001_p0)
}
  0x23   :  { %30 = dma.hbm_to_vmem [thread:$0]  %s1267_s0, 128, %s28_s27, [#allocation3]  }
  0x24   :  { %s1100_s14 = smov [#allocation7]   ;;  %s1101_s16 = smov [#allocation10]  }
  0x25   :  { %s50_s15 = sshll.u32 %s1100_s14, 4  ;;  %s78_s17 = sshll.u32 %s1101_s16, 4  ;;  %s51_s15 = int_to_ptr.vmem [resolvable:$true] %s50_s15  ;;  %s79_s17 = int_to_ptr.vmem [resolvable:$true] %s78_s17 }
  0x26   :  { %s1013_s18 = scalar_lea.vmem %s51_s15, 1024  ;;  %p1018_p2 = scmp.lt.s32.totalorder %s51_s15, %s51_s15 }
  0x27   :  { %p1014_p1 = scmp.ne.s32.totalorder %s51_s15, %s1013_s18  ;;  %p1019_p3 = scmp.lt.s32.totalorder %s1013_s18, %s1013_s18 }
  0x29   :  { %p1020_p4 = por %p1019_p3, %p1018_p2 }
  0x2b   :  { %p1021_p5 = pnand %p1020_p4, %p1014_p1 }
  0x2d   :  { %1024 = shalt.err (!%p1021_p5)
}
  0x2e   :  { %56 = dma.hbm_to_vmem [thread:$0]  %s1270_s3, 1024, %s51_s15, [#allocation6], %s1096_s20, %s1096_s20, %s1097_s21  }
  0x2f   :  { %s1033_s0 = scalar_lea.vmem %s79_s17, 1024  ;;  %p1038_p7 = scmp.lt.s32.totalorder %s79_s17, %s79_s17 }
  0x30   :  { %p1034_p6 = scmp.ne.s32.totalorder %s79_s17, %s1033_s0  ;;  %p1039_p8 = scmp.lt.s32.totalorder %s1033_s0, %s1033_s0 }
  0x32   :  { %p1040_p9 = por %p1039_p8, %p1038_p7 }
  0x34   :  { %p1041_p10 = pnand %p1040_p9, %p1034_p6 }
  0x36   :  { %1044 = shalt.err (!%p1041_p10)
}
  0x37   :  { %84 = dma.hbm_to_vmem [thread:$0]  %s1274_s7, 1024, %s79_s17, [#allocation9], %s1096_s20, %s1096_s20, %s1097_s21  }
  0x38   :  { %s1102_s24 = smov [#allocation11]  }
  0x39   :  { %s92_s25 = sshll.u32 %s1102_s24, 4  ;;  %s93_s25 = int_to_ptr.vmem [resolvable:$true] %s92_s25 }
  0x3a   :  { %s1053_s26 = scalar_lea.vmem %s93_s25, 1024  ;;  %p1058_p12 = scmp.lt.s32.totalorder %s93_s25, %s93_s25 }
  0x3b   :  { %p1054_p11 = scmp.ne.s32.totalorder %s93_s25, %s1053_s26  ;;  %p1059_p13 = scmp.lt.s32.totalorder %s1053_s26, %s1053_s26 }
  0x3d   :  { %p1060_p0 = por %p1059_p13, %p1058_p12 }
  0x3f   :  { %p1061_p1 = pnand %p1060_p0, %p1054_p11 }
  0x41   :  { %1064 = shalt.err (!%p1061_p1)
}
  0x42   :  { %98 = dma.hbm_to_vmem [thread:$0]  %s1276_s9, 1024, %s93_s25, [#allocation12], %s1096_s20, %s1096_s20, %s1097_s21  }
  0x43   :  { %1085 = dma.done.wait [#allocation3], 128  }
  0x44   :  { %1086 = vsyncadd [#allocation3], 4294967168 }
  0x45   :  { %1087 = dma.done.wait [#allocation6], 2048  }
  0x46   :  { %1088 = vsyncadd [#allocation6], 4294965248 }
  0x47   :  { %1089 = dma.done.wait [#allocation9], 2048  }
  0x48   :  { %1090 = vsyncadd [#allocation9], 4294965248 }
  0x49   :  { %1091 = dma.done.wait [#allocation12], 1024  }
  0x4a   :  { %1092 = vsyncadd [#allocation12], 4294966272  ;;  %v1103_v0 = vmov 0.0   ;;  %vm1104_vm0 = vmmov 0   ;;  %v905_v1 = vld [vmem:[#allocation5 + $0x38] sm:$0xff]   ;;  %v906_v2 = vld [vmem:[#allocation5 + $0x30] sm:$0xff]  }
  0x4b   :  { %794 = vmatprep.subr.bf16.mxu0 %v1103_v0  ;;  %810 = vmatprep.mubr.msk.bf16.mxu0 %vm1104_vm0, %v1103_v0  ;;  %v907_v3 = vld [vmem:[#allocation5 + $0x28] sm:$0xff]   ;;  %v913_v4 = vld [vmem:[#allocation7 + $0x38] sm:$0xff]   ;;  %v908_v5 = vld [vmem:[#allocation5 + $0x20] sm:$0xff]   ;;  %s1105_s1 = smov [#allocation13]  }
  0x4c   :  { %814 = vmatprep.subr.bf16.mxu1 %v1103_v0  ;;  %830 = vmatprep.mubr.msk.bf16.mxu1 %vm1104_vm0, %v1103_v0  ;;  %v914_v6 = vld [vmem:[#allocation7 + $0x30] sm:$0xff]   ;;  %v909_v7 = vld [vmem:[#allocation5 + $0x18] sm:$0xff]   ;;  %v915_v8 = vld [vmem:[#allocation7 + $0x28] sm:$0xff]   ;;  %s692_s12 = sshll.u32 %s1105_s1, 4  ;;  %s693_s12 = int_to_ptr.vmem [resolvable:$true] %s692_s12 }
  0x4d   :  { %795 = vmatpush3.bf16.msra.mxu0 %v905_v1  ;;  %815 = vmatpush3.bf16.msra.mxu1 %v913_v4  ;;  %v910_v9 = vld [vmem:[#allocation5 + $0x10] sm:$0xff]   ;;  %v916_v10 = vld [vmem:[#allocation7 + $0x20] sm:$0xff]   ;;  %v911_v11 = vld [vmem:[#allocation5 + $0x8] sm:$0xff]   ;;  %p1070_p3 = scmp.lt.s32.totalorder %s693_s12, %s693_s12 }
  0x4e   :  { %796 = vmatprep.subr.bf16.mxu0 %v1103_v0  ;;  %816 = vmatprep.subr.bf16.mxu1 %v1103_v0  ;;  %v917_v12 = vld [vmem:[#allocation7 + $0x18] sm:$0xff]   ;;  %v912_v13 = vld [vmem:[#allocation5] sm:$0xff]   ;;  %v918_v15 = vld [vmem:[#allocation7 + $0x10] sm:$0xff]  }
  0x4f   :  { %v120_v14 = vld [vmem:[#allocation2] sm:$0xff]  ;;  %v919_v17 = vld [vmem:[#allocation7 + $0x8] sm:$0xff]   ;;  %v920_v18 = vld [vmem:[#allocation7] sm:$0xff]  }
  0x50   :  { %v121_v16 = vpack.c.bf16 %v120_v14, %v120_v14  ;;  %v921_v19 = vld [vmem:[#allocation8 + $0x38] sm:$0xff]   ;;  %v922_v20 = vld [vmem:[#allocation8 + $0x30] sm:$0xff]   ;;  %v923_v21 = vld [vmem:[#allocation8 + $0x28] sm:$0xff]  }
  0x51   :  { %797 = vmatpush3.bf16.msra.mxu0 %v906_v2  ;;  %817 = vmatpush3.bf16.msra.mxu1 %v914_v6  ;;  %v924_v22 = vld [vmem:[#allocation8 + $0x20] sm:$0xff]   ;;  %v925_v23 = vld [vmem:[#allocation8 + $0x18] sm:$0xff]   ;;  %v926_v24 = vld [vmem:[#allocation8 + $0x10] sm:$0xff]  }
  0x52   :  { %798 = vmatprep.subr.bf16.mxu0 %v1103_v0  ;;  %818 = vmatprep.subr.bf16.mxu1 %v1103_v0  ;;  %v704_v25 = vld [vmem:[%s1269_s2] ss:$0 sm:$0xff]  ;;  %v927_v33 = vld [vmem:[#allocation8 + $0x8] sm:$0xff]   ;;  %v928_v34 = vld [vmem:[#allocation8] sm:$0xff]  }
  0x53   :  { %v929_v35 = vld [vmem:[#allocation10 + $0x38] sm:$0xff]   ;;  %v930_v36 = vld [vmem:[#allocation10 + $0x30] sm:$0xff]   ;;  %v931_v37 = vld [vmem:[#allocation10 + $0x28] sm:$0xff]  }
  0x54   :  { %v932_v38 = vld [vmem:[#allocation10 + $0x20] sm:$0xff]   ;;  %v933_v39 = vld [vmem:[#allocation10 + $0x18] sm:$0xff]   ;;  %v934_v40 = vld [vmem:[#allocation10 + $0x10] sm:$0xff]  }
  0x55   :  { %799 = vmatpush3.bf16.msra.mxu0 %v907_v3  ;;  %819 = vmatpush3.bf16.msra.mxu1 %v915_v8  ;;  %v713_v41 = vld [vmem:[%s1271_s4] ss:$0 sm:$0xff]  ;;  %v935_v49 = vld [vmem:[#allocation10 + $0x8] sm:$0xff]   ;;  %v936_v50 = vld [vmem:[#allocation10] sm:$0xff]  }
  0x56   :  { %800 = vmatprep.subr.bf16.mxu0 %v1103_v0  ;;  %820 = vmatprep.subr.bf16.mxu1 %v1103_v0  ;;  %v937_v51 = vld [vmem:[#allocation11 + $0x38] sm:$0xff]   ;;  %v938_v52 = vld [vmem:[#allocation11 + $0x30] sm:$0xff]   ;;  %v939_v53 = vld [vmem:[#allocation11 + $0x28] sm:$0xff]  }
  0x57   :  { %v940_v54 = vld [vmem:[#allocation11 + $0x20] sm:$0xff]   ;;  %v941_v55 = vld [vmem:[#allocation11 + $0x18] sm:$0xff]   ;;  %v942_v56 = vld [vmem:[#allocation11 + $0x10] sm:$0xff]  }
  0x58   :  { %v722_v57 = vld [vmem:[%s1273_s6] ss:$0 sm:$0xff]  ;;  %v943_v2 = vld [vmem:[#allocation11 + $0x8] sm:$0xff]   ;;  %v944_v3 = vld [vmem:[#allocation11] sm:$0xff]  }
  0x59   :  { %801 = vmatpush3.bf16.msra.mxu0 %v908_v5  ;;  %821 = vmatpush3.bf16.msra.mxu1 %v916_v10  ;;  %v731_v4 = vld [vmem:[%s1275_s8] ss:$0 sm:$0xff]  ;;  %s1065_s8 = scalar_lea.vmem %s693_s12, 128 }
  0x5a   :  { %802 = vmatprep.subr.bf16.mxu0 %v1103_v0  ;;  %822 = vmatprep.subr.bf16.mxu1 %v1103_v0  ;;  %p1066_p2 = scmp.ne.s32.totalorder %s693_s12, %s1065_s8  ;;  %p1071_p4 = scmp.lt.s32.totalorder %s1065_s8, %s1065_s8 }
  0x5c   :  { %p1072_p5 = por %p1071_p4, %p1070_p3 }
  0x5d   :  { %803 = vmatpush3.bf16.msra.mxu0 %v909_v7  ;;  %823 = vmatpush3.bf16.msra.mxu1 %v917_v12  ;;  %v740_v12 = vld [vmem:[%s1277_s10] ss:$0 sm:$0xff] }
  0x5e   :  { %804 = vmatprep.subr.bf16.mxu0 %v1103_v0  ;;  %824 = vmatprep.subr.bf16.mxu1 %v1103_v0  ;;  %p1073_p6 = pnand %p1072_p5, %p1066_p2 }
  0x61   :  { %805 = vmatpush3.bf16.msra.mxu0 %v910_v9  ;;  %825 = vmatpush3.bf16.msra.mxu1 %v918_v15 }
  0x62   :  { %806 = vmatprep.subr.bf16.mxu0 %v1103_v0  ;;  %826 = vmatprep.subr.bf16.mxu1 %v1103_v0 }
  0x65   :  { %807 = vmatpush3.bf16.msra.mxu0 %v911_v11  ;;  %827 = vmatpush3.bf16.msra.mxu1 %v919_v17 }
  0x66   :  { %808 = vmatprep.subr.bf16.mxu0 %v1103_v0  ;;  %828 = vmatprep.subr.bf16.mxu1 %v1103_v0 }
  0x69   :  { %809 = vmatpush3.bf16.msra.mxu0 %v912_v13  ;;  %829 = vmatpush3.bf16.msra.mxu1 %v920_v18 }
  0x6a   :  { %834 = vmatprep.subr.bf16.mxu0 %v1103_v0  ;;  %854 = vmatprep.subr.bf16.mxu1 %v1103_v0 }
  0x6c   :  { %811 = vmatmul.mubr.bf16.vlgmr.msra.gmra.mxu0 %v121_v16 }
  0x6d   :  { %850 = vmatprep.mubr.msk.bf16.mxu0 %vm1104_vm0, %v1103_v0  ;;  %835 = vmatpush3.bf16.msra.mxu0 %v921_v19 }
  0x6e   :  { %836 = vmatprep.subr.bf16.mxu0 %v1103_v0 }
  0x71   :  { %837 = vmatpush3.bf16.msra.mxu0 %v922_v20 }
  0x72   :  { %838 = vmatprep.subr.bf16.mxu0 %v1103_v0 }
  0x75   :  { %839 = vmatpush3.bf16.msra.mxu0 %v923_v21 }
  0x76   :  { %840 = vmatprep.subr.bf16.mxu0 %v1103_v0 }
  0x79   :  { %841 = vmatpush3.bf16.msra.mxu0 %v924_v22 }
  0x7a   :  { %842 = vmatprep.subr.bf16.mxu0 %v1103_v0 }
  0x7d   :  { %843 = vmatpush3.bf16.msra.mxu0 %v925_v23 }
  0x7e   :  { %844 = vmatprep.subr.bf16.mxu0 %v1103_v0 }
  0x81   :  { %845 = vmatpush3.bf16.msra.mxu0 %v926_v24 }
  0x82   :  { %846 = vmatprep.subr.bf16.mxu0 %v1103_v0 }
  0x85   :  { %847 = vmatpush3.bf16.msra.mxu0 %v927_v33 }
  0x86   :  { %848 = vmatprep.subr.bf16.mxu0 %v1103_v0 }
  0x89   :  { %849 = vmatpush3.bf16.msra.mxu0 %v928_v34 }
  0x8a   :  { %874 = vmatprep.subr.bf16.mxu0 %v1103_v0 }
 0x12c   :  { %v227_v26 = vpop.f32.mrf.mxu0 }
 0x12d   :  { %v228_v27 = vadd.f32 %v704_v25, %v227_v26 }
 0x12e   :  { %v812_v28 = vpop.f32.mrf.mxu0 }
 0x12f   :  { %v233_v29 = vmax.f32 %v228_v27, 0.0 }
 0x130   :  { %v230_v30 = vpop.f32.mrf.mxu0 }
 0x131   :  { %v234_v31 = vpack.c.bf16 %v233_v29, %v233_v29 }
 0x132   :  { %v813_v32 = vpop.f32.mrf.mxu0 }
 0x133   :  { %831 = vmatmul.mubr.bf16.vlgmr.msra.gmra.mxu1 %v234_v31 }
 0x134   :  { %870 = vmatprep.mubr.msk.bf16.mxu1 %vm1104_vm0, %v1103_v0  ;;  %855 = vmatpush3.bf16.msra.mxu1 %v929_v35 }
 0x135   :  { %856 = vmatprep.subr.bf16.mxu1 %v1103_v0 }
 0x138   :  { %857 = vmatpush3.bf16.msra.mxu1 %v930_v36 }
 0x139   :  { %858 = vmatprep.subr.bf16.mxu1 %v1103_v0 }
 0x13c   :  { %859 = vmatpush3.bf16.msra.mxu1 %v931_v37 }
 0x13d   :  { %860 = vmatprep.subr.bf16.mxu1 %v1103_v0 }
 0x140   :  { %861 = vmatpush3.bf16.msra.mxu1 %v932_v38 }
 0x141   :  { %862 = vmatprep.subr.bf16.mxu1 %v1103_v0 }
 0x144   :  { %863 = vmatpush3.bf16.msra.mxu1 %v933_v39 }
 0x145   :  { %864 = vmatprep.subr.bf16.mxu1 %v1103_v0 }
 0x148   :  { %865 = vmatpush3.bf16.msra.mxu1 %v934_v40 }
 0x149   :  { %866 = vmatprep.subr.bf16.mxu1 %v1103_v0 }
 0x14c   :  { %867 = vmatpush3.bf16.msra.mxu1 %v935_v49 }
 0x14d   :  { %868 = vmatprep.subr.bf16.mxu1 %v1103_v0 }
 0x150   :  { %869 = vmatpush3.bf16.msra.mxu1 %v936_v50 }
 0x1f3   :  { %v340_v42 = vpop.f32.mrf.mxu1 }
 0x1f4   :  { %v341_v43 = vadd.f32 %v713_v41, %v340_v42 }
 0x1f5   :  { %v832_v44 = vpop.f32.mrf.mxu1 }
 0x1f6   :  { %v346_v45 = vmax.f32 %v341_v43, 0.0 }
 0x1f7   :  { %v343_v46 = vpop.f32.mrf.mxu1 }
 0x1f8   :  { %v347_v47 = vpack.c.bf16 %v346_v45, %v346_v45 }
 0x1f9   :  { %v833_v48 = vpop.f32.mrf.mxu1 }
 0x1fa   :  { %851 = vmatmul.mubr.bf16.vlgmr.msra.gmra.mxu0 %v347_v47 }
 0x1fb   :  { %890 = vmatprep.mubr.msk.bf16.mxu0 %vm1104_vm0, %v1103_v0  ;;  %875 = vmatpush3.bf16.msra.mxu0 %v937_v51 }
 0x1fc   :  { %876 = vmatprep.subr.bf16.mxu0 %v1103_v0 }
 0x1ff   :  { %877 = vmatpush3.bf16.msra.mxu0 %v938_v52 }
 0x200   :  { %878 = vmatprep.subr.bf16.mxu0 %v1103_v0 }
 0x203   :  { %879 = vmatpush3.bf16.msra.mxu0 %v939_v53 }
 0x204   :  { %880 = vmatprep.subr.bf16.mxu0 %v1103_v0 }
 0x207   :  { %881 = vmatpush3.bf16.msra.mxu0 %v940_v54 }
 0x208   :  { %882 = vmatprep.subr.bf16.mxu0 %v1103_v0 }
 0x20b   :  { %883 = vmatpush3.bf16.msra.mxu0 %v941_v55 }
 0x20c   :  { %884 = vmatprep.subr.bf16.mxu0 %v1103_v0 }
 0x20f   :  { %885 = vmatpush3.bf16.msra.mxu0 %v942_v56 }
 0x210   :  { %886 = vmatprep.subr.bf16.mxu0 %v1103_v0 }
 0x213   :  { %887 = vmatpush3.bf16.msra.mxu0 %v943_v2 }
 0x214   :  { %888 = vmatprep.subr.bf16.mxu0 %v1103_v0 }
 0x217   :  { %889 = vmatpush3.bf16.msra.mxu0 %v944_v3 }
 0x2ba   :  { %v453_v58 = vpop.f32.mrf.mxu0 }
 0x2bb   :  { %v454_v59 = vadd.f32 %v722_v57, %v453_v58 }
 0x2bc   :  { %v852_v60 = vpop.f32.mrf.mxu0 }
 0x2bd   :  { %v459_v61 = vmax.f32 %v454_v59, 0.0 }
 0x2be   :  { %v456_v62 = vpop.f32.mrf.mxu0 }
 0x2bf   :  { %v460_v63 = vpack.c.bf16 %v459_v61, %v459_v61 }
 0x2c0   :  { %v853_v1 = vpop.f32.mrf.mxu0 }
 0x2c1   :  { %871 = vmatmul.mubr.bf16.vlgmr.msra.gmra.mxu1 %v460_v63 }
 0x381   :  { %v566_v5 = vpop.f32.mrf.mxu1 }
 0x382   :  { %v567_v6 = vadd.f32 %v731_v4, %v566_v5 }
 0x383   :  { %v872_v7 = vpop.f32.mrf.mxu1 }
 0x384   :  { %v572_v8 = vmax.f32 %v567_v6, 0.0 }
 0x385   :  { %v569_v9 = vpop.f32.mrf.mxu1 }
 0x386   :  { %v573_v10 = vpack.c.bf16 %v572_v8, %v572_v8 }
 0x387   :  { %v873_v11 = vpop.f32.mrf.mxu1 }
 0x388   :  { %891 = vmatmul.mubr.bf16.vlgmr.msra.gmra.mxu0 %v573_v10 }
 0x448   :  { %v679_v0 = vpop.f32.mrf.mxu0 }
 0x449   :  { %v680_v13 = vadd.f32 %v740_v12, %v679_v0 }
 0x44a   :  { %v892_v14 = vpop.f32.mrf.mxu0 }
 0x44b   :  { %685 = vst [vmem:[#allocation13] sm:$0xff] %v680_v13 }
 0x44c   :  { %v682_v15 = vpop.f32.mrf.mxu0 }
 0x44d   :  { %1076 = shalt.err (!%p1073_p6)
}
 0x44e   :  { %695 = dma.vmem_to_hbm [thread:$0]  %s693_s12, 128, %s1278_s11, [#allocation4]   ;;  %v893_v16 = vpop.f32.mrf.mxu0 }
 0x44f   :  { %1093 = dma.done.wait [#allocation4], 128  }
 0x450   :  { %1094 = vsyncadd [#allocation4], 4294967168 }
 0x451   :  { %699 = vsyncpa [#allocation3], 1 }
 0x452   :  { %700 = vsyncpa [#allocation6], 1 }
 0x453   :  { %701 = vsyncpa [#allocation9], 1 }
 0x454   :  { %702 = vsyncpa [#allocation12], 1 }
 0x455   :  { %703 = vsyncpa [#allocation4], 1 }

</bundles_post_ra>
